<compile_context>
chip_gen: v7x
topology: tpu7x:2x2x1
jax: 0.10.0
libtpu: 0.0.40
codegen_flags: <defaults>
</compile_context>

<pallas_src>
import math
import functools
import numpy as np
import jax
import jax.numpy as jnp
from jax import lax
from jax.experimental import pallas as pl
from jax.experimental.pallas import tpu as pltpu


# ----------------------------- small utilities -------------------------------
@functools.lru_cache(maxsize=None)
def _weight_pipeline_mode():
    """Probe whether pipeline_mode=pl.Buffered(1) (single-buffered grid-invariant
    inputs) is supported by this jax/Mosaic build; returns the mode or None."""
    def _copy(x_ref, o_ref):
        o_ref[...] = x_ref[...]
    try:
        mode = pl.Buffered(1)
        spec = pl.BlockSpec((8, 128), lambda i: (0, 0), pipeline_mode=mode)
        out = pl.pallas_call(
            _copy,
            out_shape=jax.ShapeDtypeStruct((8, 128), jnp.float32),
            grid=(2,),
            in_specs=[spec],
            out_specs=pl.BlockSpec((8, 128), lambda i: (0, 0)),
        )(jnp.ones((8, 128), jnp.float32))
        jax.block_until_ready(out)
        if bool(jnp.all(out == 1.0)):
            return mode
    except Exception:
        pass
    return None


def _weight_spec(shape, mode):
    """Grid-invariant (constant index_map) weight spec, single-buffered when possible."""
    nd = len(shape)
    if mode is None:
        return pl.BlockSpec(shape, lambda b: (0,) * nd)
    return pl.BlockSpec(shape, lambda b: (0,) * nd, pipeline_mode=mode)


def _vmem_limit_bytes(act_block_bytes, weight_bytes, scratch_bytes, weights_single):
    """Re-derived scoped-VMEM limit: double-buffered per-batch blocks, weights
    single- or double-buffered, scratches, plus margin for Mosaic transients.
    Capped at 40 MiB so a v7x TensorCore (64 MiB) keeps headroom."""
    wbuf = 1 if weights_single else 2
    est = 2 * act_block_bytes + wbuf * weight_bytes + scratch_bytes
    return int(min(max(3 * est + (4 << 20), 16 << 20), 40 << 20))


def _compiler_params(vmem_limit):
    # Batch iterations are independent -> "parallel" lets Mosaic shard the grid
    # across v7x's 2 TensorCores (neutral on single-TC v5e/v6e).
    return pltpu.CompilerParams(dimension_semantics=("parallel",),
                                vmem_limit_bytes=vmem_limit)


# ------------------------- in-kernel building blocks -------------------------
def _cln(x, w_row, b_row, mask_col, eps):
    """Conditional LayerNorm with precomputed per-batch weight/bias rows.
    x: (S,H) f32, w_row/b_row: (1,H), mask_col: (S,1)."""
    mean = jnp.mean(x, axis=-1, keepdims=True)
    var = jnp.mean((x - mean) ** 2, axis=-1, keepdims=True)   # torch.var(unbiased=False)
    normed = (x - mean) * lax.rsqrt(var + eps)
    return (w_row * normed + b_row) * mask_col


def _mha(h16, mask_row, wq_ref, bq_ref, kwt_ref, kbt_ref, wv_ref, bv_ref,
         ow_ref, ob_ref, kt_scr, acc_scr, *, n_head, d_head):
    """nn.MultiheadAttention (batch_first) with the module's *float*
    key_padding_mask, which PyTorch adds directly to the attention logits
    (reproduced faithfully here and in the reference).

    h16: (S,H) bf16.  Per-head work runs inside a lax.fori_loop; the only
    dynamic slicing is on leading dims (weight refs) and the sublane dim of the
    transposed-K scratch, so all VMEM stores stay full-lane-width."""
    S, H = h16.shape

    # K projected once, already transposed: kT = W_k^T @ h^T + b_k^T  -> (H, S).
    kt_scr[...] = (lax.dot_general(kwt_ref[...], h16, (((1,), (1,)), ((), ())),
                                   preferred_element_type=jnp.float32)
                   + kbt_ref[...])

    # accumulator starts at the out-projection bias; heads add their own chunk
    # of the out-projection (sum_h ctx_h @ W_o[h] + b_o == MHA output).
    acc_scr[...] = jnp.broadcast_to(ob_ref[...], (S, H))

    def head(hd, carry):
        lo = pl.multiple_of(hd * d_head, d_head)
        # Q (scale folded into weights/bias in the wrapper) and V per head.
        qh = (jnp.dot(h16, wq_ref[hd], preferred_element_type=jnp.float32)
              + bq_ref[hd]).astype(jnp.bfloat16)                       # (S, d)
        kth = kt_scr[pl.ds(lo, d_head), :].astype(jnp.bfloat16)        # (d, S)
        logits = jnp.dot(qh, kth, preferred_element_type=jnp.float32) + mask_row
        m = jnp.max(logits, axis=-1, keepdims=True)
        p = jnp.exp(logits - m)
        # NOTE: approx reciprocal (EUP slot) adds ~1e-3 rel. error on attention
        # weights -- covered by the bf16-MXU test tolerance.
        p = p * pl.reciprocal(jnp.sum(p, axis=-1, keepdims=True), approx=True)
        vh = (jnp.dot(h16, wv_ref[hd], preferred_element_type=jnp.float32)
              + bv_ref[hd]).astype(jnp.bfloat16)                       # (S, d)
        ctx = jnp.dot(p.astype(jnp.bfloat16), vh,
                      preferred_element_type=jnp.float32)              # (S, d)
        acc_scr[...] += jnp.dot(ctx.astype(jnp.bfloat16), ow_ref[hd],
                                preferred_element_type=jnp.float32)    # (S, H)
        return carry

    lax.fori_loop(0, n_head, head, 0)
    return acc_scr[...]


# ------------ CLN + TriggerExtractionLayerMask_woSyntactic (fused) -----------
def _tem_kernel(x_ref, cw_ref, cb_ref, ms_ref, mk_ref,
                wq_ref, bq_ref, kwt_ref, kbt_ref, wv_ref, bv_ref, ow_ref, ob_ref,
                fwx_ref, fwa_ref, fb_ref,
                h_ref, se_ref, kt_scr, acc_scr, *, n_head, d_head, eps):
    h = _cln(x_ref[0].astype(jnp.float32), cw_ref[0], cb_ref[0], ms_ref[0], eps)  # (S,H)
    h_ref[0] = h.astype(h_ref.dtype)            # H_s_type (bf16 HBM hop to the AEM stage)
    h16 = h.astype(jnp.bfloat16)
    attn = _mha(h16, mk_ref[0], wq_ref, bq_ref, kwt_ref, kbt_ref, wv_ref, bv_ref,
                ow_ref, ob_ref, kt_scr, acc_scr, n_head=n_head, d_head=d_head)
    a16 = attn.astype(jnp.bfloat16)
    # start/end logits in transposed (2,S) form (lane-dense output store):
    #   cat([h, attn]) @ f_w == h @ f_w[:H] + attn @ f_w[H:]
    logits_t = (lax.dot_general(fwx_ref[...], h16, (((1,), (1,)), ((), ())),
                                preferred_element_type=jnp.float32)
                + lax.dot_general(fwa_ref[...], a16, (((1,), (1,)), ((), ())),
                                  preferred_element_type=jnp.float32)
                + fb_ref[...])                                         # (2, S)
    se_ref[0] = jax.nn.sigmoid(logits_t)


# --------- CLN + ArgumentExtractionModelMask_woSyntactic (fused) -------------
def _aem_kernel(x_ref, cw_ref, cb_ref, ms_ref, mk_ref, rpe_ref,
                wq_ref, bq_ref, kwt_ref, kbt_ref, wv_ref, bv_ref, ow_ref, ob_ref,
                fwx_ref, fwa_ref, fwr_ref, fb_ref,
                se_ref, kt_scr, acc_scr, *, n_head, d_head, eps):
    h = _cln(x_ref[0].astype(jnp.float32), cw_ref[0], cb_ref[0], ms_ref[0], eps)
    h16 = h.astype(jnp.bfloat16)
    attn = _mha(h16, mk_ref[0], wq_ref, bq_ref, kwt_ref, kbt_ref, wv_ref, bv_ref,
                ow_ref, ob_ref, kt_scr, acc_scr, n_head=n_head, d_head=d_head)
    a16 = attn.astype(jnp.bfloat16)
    rpe_row = rpe_ref[0]                                               # (1, S)
    # start+end fcn weights are stacked to (2R,*) in the wrapper -> one fused
    # lane-dense (2R,S) logits computation instead of two small-M matmul sets.
    logits_t = (lax.dot_general(fwx_ref[...], h16, (((1,), (1,)), ((), ())),
                                preferred_element_type=jnp.float32)
                + lax.dot_general(fwa_ref[...], a16, (((1,), (1,)), ((), ())),
                                  preferred_element_type=jnp.float32)
                + fwr_ref[...] * rpe_row                               # (2R,1)*(1,S)
                + fb_ref[...])                                         # (2R, S)
    se_ref[0] = jax.nn.sigmoid(logits_t)


# ------------------------------ wrappers -------------------------------------
def _mha_weights(p, H, n_head, d_head):
    """Split the fused in-proj / out-proj into per-head, MXU-friendly layouts.
    Q scale is folded into W_q / b_q; K weights are pre-transposed so the kernel
    projects K directly into (H,S) layout."""
    bf = jnp.bfloat16
    scale = 1.0 / math.sqrt(d_head)
    in_w, in_b = p["in_w"], p["in_b"]
    wq = (in_w[:, :H] * scale).reshape(H, n_head, d_head).transpose(1, 0, 2).astype(bf)
    bq = (in_b[0, :H] * scale).reshape(n_head, 1, d_head)
    kwt = in_w[:, H:2 * H].T.astype(bf)                     # (H_out, H_in)
    kbt = in_b[0, H:2 * H].reshape(H, 1)                    # (H, 1)
    wv = in_w[:, 2 * H:].reshape(H, n_head, d_head).transpose(1, 0, 2).astype(bf)
    bv = in_b[0, 2 * H:].reshape(n_head, 1, d_head)
    ow = p["out_w"].reshape(n_head, d_head, H).astype(bf)   # per-head out-proj rows
    ob = p["out_b"]                                         # (1, H)
    return wq, bq, kwt, kbt, wv, bv, ow, ob


def tem_forward(x, cln_w, cln_b, mask_s, mask_k, p, n_head, eps):
    B, S, H = x.shape
    if H % n_head:
        raise ValueError("hidden_size must be divisible by n_head")
    d_head = H // n_head
    bf = jnp.bfloat16
    mode = _weight_pipeline_mode()

    wq, bq, kwt, kbt, wv, bv, ow, ob = _mha_weights(p, H, n_head, d_head)
    fwx = p["f_w"][:H, :].T.astype(bf)       # (2, H)
    fwa = p["f_w"][H:, :].T.astype(bf)       # (2, H)
    fb = p["f_b"].T                          # (2, 1)
    weights = (wq, bq, kwt, kbt, wv, bv, ow, ob, fwx, fwa, fb)
    weight_bytes = sum(int(w.size) * w.dtype.itemsize for w in weights)
    act_bytes = (S * H * 4 + 2 * H * 4 + 2 * S * 4    # x block, CLN rows, masks
                 + S * H * 2 + 2 * S * 4)             # bf16 h_type out, (2,S) out
    scratch_bytes = 2 * S * H * 4
    vlim = _vmem_limit_bytes(act_bytes, weight_bytes, scratch_bytes, mode is not None)

    kernel = functools.partial(_tem_kernel, n_head=n_head, d_head=d_head, eps=eps)
    ws = lambda shape: _weight_spec(shape, mode)
    h_type, se = pl.pallas_call(
        kernel,
        out_shape=(jax.ShapeDtypeStruct((B, S, H), jnp.bfloat16),
                   jax.ShapeDtypeStruct((B, 2, S), jnp.float32)),
        grid=(B,),
        in_specs=[
            pl.BlockSpec((1, S, H), lambda b: (b, 0, 0)),   # raw H_s
            pl.BlockSpec((1, 1, H), lambda b: (b, 0, 0)),   # CLN weight row
            pl.BlockSpec((1, 1, H), lambda b: (b, 0, 0)),   # CLN bias row
            pl.BlockSpec((1, S, 1), lambda b: (b, 0, 0)),   # CLN mask column
            pl.BlockSpec((1, 1, S), lambda b: (b, 0, 0)),   # attn logit mask row
            ws((n_head, H, d_head)), ws((n_head, 1, d_head)),
            ws((H, H)), ws((H, 1)),
            ws((n_head, H, d_head)), ws((n_head, 1, d_head)),
            ws((n_head, d_head, H)), ws((1, H)),
            ws((2, H)), ws((2, H)), ws((2, 1)),
        ],
        out_specs=(pl.BlockSpec((1, S, H), lambda b: (b, 0, 0)),
                   pl.BlockSpec((1, 2, S), lambda b: (b, 0, 0))),
        scratch_shapes=[pltpu.VMEM((H, S), jnp.float32),    # transposed K
                        pltpu.VMEM((S, H), jnp.float32)],   # attention accumulator
        compiler_params=_compiler_params(vlim),
    )(x, cln_w, cln_b, mask_s, mask_k, *weights)
    return h_type, se


def aem_forward(x, cln_w, cln_b, mask_s, mask_k, rpe_row, p, n_head, eps):
    B, S, H = x.shape
    R = p["ws"].shape[1]
    d_head = H // n_head
    bf = jnp.bfloat16
    mode = _weight_pipeline_mode()

    wq, bq, kwt, kbt, wv, bv, ow, ob = _mha_weights(p, H, n_head, d_head)
    wsw, wew, bsb, beb = p["ws"], p["we"], p["bs"], p["be"]
    fwx = jnp.concatenate([wsw[:H].T, wew[:H].T], axis=0).astype(bf)              # (2R, H)
    fwa = jnp.concatenate([wsw[H:2 * H].T, wew[H:2 * H].T], axis=0).astype(bf)    # (2R, H)
    fwr = jnp.concatenate([wsw[2 * H:].T, wew[2 * H:].T], axis=0)                 # (2R, 1)
    fb = jnp.concatenate([bsb.T, beb.T], axis=0)                                  # (2R, 1)
    weights = (wq, bq, kwt, kbt, wv, bv, ow, ob, fwx, fwa, fwr, fb)
    weight_bytes = sum(int(w.size) * w.dtype.itemsize for w in weights)
    act_bytes = (S * H * 2 + 2 * H * 4 + 3 * S * 4 + 2 * R * S * 4)
    scratch_bytes = 2 * S * H * 4
    vlim = _vmem_limit_bytes(act_bytes, weight_bytes, scratch_bytes, mode is not None)

    kernel = functools.partial(_aem_kernel, n_head=n_head, d_head=d_head, eps=eps)
    ws = lambda shape: _weight_spec(shape, mode)
    se_t = pl.pallas_call(
        kernel,
        out_shape=jax.ShapeDtypeStruct((B, 2 * R, S), jnp.float32),
        grid=(B,),
        in_specs=[
            pl.BlockSpec((1, S, H), lambda b: (b, 0, 0)),   # H_s_type (bf16)
            pl.BlockSpec((1, 1, H), lambda b: (b, 0, 0)),   # CLN weight row (pooled trigger)
            pl.BlockSpec((1, 1, H), lambda b: (b, 0, 0)),   # CLN bias row
            pl.BlockSpec((1, S, 1), lambda b: (b, 0, 0)),   # CLN mask column
            pl.BlockSpec((1, 1, S), lambda b: (b, 0, 0)),   # attn logit mask row
            pl.BlockSpec((1, 1, S), lambda b: (b, 0, 0)),   # relative positional encoding
            ws((n_head, H, d_head)), ws((n_head, 1, d_head)),
            ws((H, H)), ws((H, 1)),
            ws((n_head, H, d_head)), ws((n_head, 1, d_head)),
            ws((n_head, d_head, H)), ws((1, H)),
            ws((2 * R, H)), ws((2 * R, H)), ws((2 * R, 1)), ws((2 * R, 1)),
        ],
        out_specs=pl.BlockSpec((1, 2 * R, S), lambda b: (b, 0, 0)),
        scratch_shapes=[pltpu.VMEM((H, S), jnp.float32),
                        pltpu.VMEM((S, H), jnp.float32)],
        compiler_params=_compiler_params(vlim),
    )(x, cln_w, cln_b, mask_s, mask_k, rpe_row, *weights)
    return se_t, R


# ------------------------------ glue (plain JAX) -----------------------------
def _cln_weight_bias(cond2d, w_map, b_map, t, bias):
    """Hoisted CLN weight/bias generation: one (B,H)@(H,2H) matmul in plain JAX
    (fused weight_map/bias_map), so the (H,H) maps never enter VMEM."""
    H = w_map.shape[0]
    wb = cond2d @ jnp.concatenate([w_map, b_map], axis=1)                # (B, 2H)
    return (wb[:, :H] + t)[:, None, :], (wb[:, H:] + bias)[:, None, :]   # (B,1,H) each


def _span_pool_and_rpe(h, spans):
    """_trigger_sentence_representation glue: mean-pool over the (inclusive)
    trigger span and build the relative positional encoding (returned as (B,S))."""
    h = h.astype(jnp.float32)
    B, S, H = h.shape
    idx = jnp.arange(S)[None, :]
    s0 = spans[:, 0:1]
    s1 = spans[:, 1:2]
    in_span = (idx >= s0) & (idx <= s1)                                   # (B, S)
    cnt = jnp.sum(in_span, axis=1, keepdims=True).astype(jnp.float32)
    pooled = jnp.sum(h * in_span[..., None], axis=1) / cnt                # (B, H)
    rpe = jnp.where(idx <= s0, idx - s0, jnp.where(idx >= s1, idx - s1, 0))
    return pooled, rpe.astype(jnp.float32)                                # (B,H), (B,S)


def jointee_mask_forward(params, H_s, H_c, attention_mask, trigger_spans,
                         n_head, eps=1e-15):
    """Training-phase forward of JointEE_Mask, starting from post-PLM embeddings."""
    mask_s = attention_mask[..., None]        # (B,S,1)  -- CLN elementwise mask
    mask_k = attention_mask[:, None, :]       # (B,1,S)  -- float key_padding_mask (added to logits)

    cw1, cb1 = _cln_weight_bias(H_c[:, 0, :], params["w_map"], params["b_map"],
                                params["t"], params["bias"])
    h_type, se = tem_forward(H_s, cw1, cb1, mask_s, mask_k, params["tem"], n_head, eps)
    trig_s, trig_e = se[:, 0, :, None], se[:, 1, :, None]                 # (B,S,1) each

    pooled, rpe = _span_pool_and_rpe(h_type, trigger_spans)
    cw2, cb2 = _cln_weight_bias(pooled, params["w_map"], params["b_map"],
                                params["t"], params["bias"])
    se_args, R = aem_forward(h_type, cw2, cb2, mask_s, mask_k, rpe[:, None, :],
                             params["aem"], n_head, eps)
    args = jnp.transpose(se_args, (0, 2, 1))                              # (B,S,2R)
    arg_s, arg_e = args[..., :R], args[..., R:]
    return {"trigger_start": trig_s, "trigger_end": trig_e,
            "argument_start": arg_s, "argument_end": arg_e, "mask": attention_mask}


# --------------------------- pure-JAX reference ------------------------------
def _ref_mha(x, mask, p, n_head):
    B, S, H = x.shape
    d = H // n_head
    qkv = x @ p["in_w"] + p["in_b"]
    q, k, v = qkv[..., :H], qkv[..., H:2 * H], qkv[..., 2 * H:]
    sp = lambda t: t.reshape(B, S, n_head, d).transpose(0, 2, 1, 3)
    q, k, v = sp(q) / math.sqrt(d), sp(k), sp(v)
    logits = jnp.einsum("bhqd,bhkd->bhqk", q, k) + mask[:, None, None, :]
    w = jax.nn.softmax(logits, axis=-1)
    o = jnp.einsum("bhqk,bhkd->bhqd", w, v).transpose(0, 2, 1, 3).reshape(B, S, H)
    return o @ p["out_w"] + p["out_b"]


def _ref_cln(x, cond, mask, w_map, b_map, t, bias, eps):
    weight = cond @ w_map + t
    bvec = cond @ b_map + bias
    mean = jnp.mean(x, -1, keepdims=True)
    var = jnp.mean((x - mean) ** 2, -1, keepdims=True)
    return (weight * (x - mean) / jnp.sqrt(var + eps) + bvec) * mask[..., None]


def ref_forward(params, H_s, H_c, attention_mask, trigger_spans, n_head, eps=1e-15):
    h = _ref_cln(H_s, H_c, attention_mask, params["w_map"], params["b_map"],
                 params["t"], params["bias"], eps)
    a = _ref_mha(h, attention_mask, params["tem"], n_head)
    se = jax.nn.sigmoid(jnp.concatenate([h, a], -1) @ params["tem"]["f_w"] + params["tem"]["f_b"])
    trig_s, trig_e = se[..., 0:1], se[..., 1:2]
    pooled, rpe = _span_pool_and_rpe(h, trigger_spans)
    h2 = _ref_cln(h, pooled[:, None, :], attention_mask, params["w_map"], params["b_map"],
                  params["t"], params["bias"], eps)
    a2 = _ref_mha(h2, attention_mask, params["aem"], n_head)
    final = jnp.concatenate([h2, a2, rpe[..., None]], -1)
    arg_s = jax.nn.sigmoid(final @ params["aem"]["ws"] + params["aem"]["bs"])
    arg_e = jax.nn.sigmoid(final @ params["aem"]["we"] + params["aem"]["be"])
    return {"trigger_start": trig_s, "trigger_end": trig_e,
            "argument_start": arg_s, "argument_end": arg_e, "mask": attention_mask}


# --------------------------------- params ------------------------------------
def make_params(key, H, num_roles):
    ks = list(jax.random.split(key, 16))
    nxt = lambda: ks.pop()
    u = lambda shape, s=0.1: jax.random.uniform(nxt(), shape, jnp.float32, -s, s)
    # NOTE: the module zero-inits weight_map/bias_map and sets t=1, bias=0 (CLN is
    # a no-op at init); small random values here exercise the kernel instead.
    return {
        "w_map": u((H, H)),                     # weight_map.weight, stored input-major
        "b_map": u((H, H)),                     # bias_map.weight,   stored input-major
        "t": jnp.array(1.0, jnp.float32),
        "bias": jnp.array(0.05, jnp.float32),
        "tem": {
            "in_w": u((H, 3 * H)), "in_b": u((1, 3 * H)),
            "out_w": u((H, H)), "out_b": u((1, H)),
            "f_w": u((2 * H, 2)), "f_b": jnp.zeros((1, 2), jnp.float32),   # fcn bias = 0 (init_weights)
        },
        "aem": {
            "in_w": u((H, 3 * H)), "in_b": u((1, 3 * H)),
            "out_w": u((H, H)), "out_b": u((1, H)),
            "ws": u((2 * H + 1, num_roles)), "bs": jnp.zeros((1, num_roles), jnp.float32),
            "we": u((2 * H + 1, num_roles)), "be": jnp.zeros((1, num_roles), jnp.float32),
        },
    }


if __name__ == "__main__":
    # NOTE: demo shapes are intentionally tiny; perf tuning (Buffered depth,
    # q-tile size, vmem limits) should be re-done at realistic S/H/n_head.
    B, S, H, NH, R = 2, 8, 32, 4, 8   # batch, seq, hidden, n_head, num role types
    key = jax.random.PRNGKey(0)
    kp, kx, kc = jax.random.split(key, 3)
    params = make_params(kp, H, R)
    H_s = jax.random.normal(kx, (B, S, H), jnp.float32)   # post-PLM sentence embeddings (sliced)
    H_c = jax.random.normal(kc, (B, 1, H), jnp.float32)   # mean-pooled event-type condition
    attention_mask = jnp.array([[1, 1, 1, 1, 1, 1, 0, 0],
                                [1, 1, 1, 1, 1, 1, 1, 1]], jnp.float32)
    triggers = jnp.array([[1, 3], [2, 5]], jnp.int32)     # gt trigger spans (inclusive)

    out = jointee_mask_forward(params, H_s, H_c, attention_mask, triggers, n_head=NH)
    jax.block_until_ready(out)

    # bf16 MXU inputs (f32 accumulation) + bf16 H_s_type HBM hop + approx
    # softmax reciprocal -> compare with loosened tolerance against the f32 ref.
    ref = ref_forward(params, H_s, H_c, attention_mask, triggers, n_head=NH)
    for name in ("trigger_start", "trigger_end", "argument_start", "argument_end"):
        np.testing.assert_allclose(np.asarray(out[name]), np.asarray(ref[name]),
                                   rtol=2e-2, atol=2e-2)
    print("KERNEL_OK")
</pallas_src>

<mosaic_0001>
module attributes {stable_mosaic.version = 11 : i64} {
  func.func @_copy(%arg0: i32, %arg1: memref<8x128xf32, #tpu.memory_space<vmem>>, %arg2: memref<8x128xf32, #tpu.memory_space<vmem>>) attributes {dimension_semantics = [#tpu.dimension_semantics<arbitrary>], iteration_bounds = array<i64: 2>, scalar_prefetch = 0 : i64, scratch_operands = 0 : i64, tpu.core_type = #tpu.core_type<tc>, window_params = [{pipeline_mode = #tpu.pipeline_mode<synchronous>, transform_indices = @transform_0, window_bounds = array<i64: 8, 128>}, {pipeline_mode = #tpu.pipeline_mode<synchronous>, transform_indices = @transform_1, window_bounds = array<i64: 8, 128>}]} {
    %c0 = arith.constant 0 : index
    %c0_0 = arith.constant 0 : index
    %0 = vector.load %arg1[%c0, %c0_0] : memref<8x128xf32, #tpu.memory_space<vmem>>, vector<8x128xf32>
    %c0_1 = arith.constant 0 : index
    %c0_2 = arith.constant 0 : index
    %1 = vector.load %arg2[%c0_1, %c0_2] : memref<8x128xf32, #tpu.memory_space<vmem>>, vector<8x128xf32>
    tpu.vector_store %arg2[%c0_1, %c0_2], %0 {strides = array<i32>} : memref<8x128xf32, #tpu.memory_space<vmem>>, vector<8x128xf32>,
    return
  }
  func.func @transform_0(%arg0: i32) -> (i32, i32) {
    %c0_i32 = arith.constant 0 : i32
    %c0_i32_0 = arith.constant 0 : i32
    %c0_i32_1 = arith.constant 0 : i32
    return %c0_i32, %c0_i32_0 : i32, i32
  }
  func.func @transform_1(%arg0: i32) -> (i32, i32) {
    %c0_i32 = arith.constant 0 : i32
    %c0_i32_0 = arith.constant 0 : i32
    %c0_i32_1 = arith.constant 0 : i32
    return %c0_i32, %c0_i32_0 : i32, i32
  }
}

module attributes {stable_mosaic.version = 11 : i64} {
  func.func @_tem_kernel(%arg0: i32, %arg1: memref<1x8x32xf32, #tpu.memory_space<vmem>>, %arg2: memref<1x1x32xf32, #tpu.memory_space<vmem>>, %arg3: memref<1x1x32xf32, #tpu.memory_space<vmem>>, %arg4: memref<1x8x1xf32, #tpu.memory_space<vmem>>, %arg5: memref<1x1x8xf32, #tpu.memory_space<vmem>>, %arg6: memref<4x32x8xbf16, #tpu.memory_space<vmem>>, %arg7: memref<4x1x8xf32, #tpu.memory_space<vmem>>, %arg8: memref<32x32xbf16, #tpu.memory_space<vmem>>, %arg9: memref<32x1xf32, #tpu.memory_space<vmem>>, %arg10: memref<4x32x8xbf16, #tpu.memory_space<vmem>>, %arg11: memref<4x1x8xf32, #tpu.memory_space<vmem>>, %arg12: memref<4x8x32xbf16, #tpu.memory_space<vmem>>, %arg13: memref<1x32xf32, #tpu.memory_space<vmem>>, %arg14: memref<2x32xbf16, #tpu.memory_space<vmem>>, %arg15: memref<2x32xbf16, #tpu.memory_space<vmem>>, %arg16: memref<2x1xf32, #tpu.memory_space<vmem>>, %arg17: memref<1x8x32xbf16, #tpu.memory_space<vmem>>, %arg18: memref<1x2x8xf32, #tpu.memory_space<vmem>>, %arg19: memref<32x8xf32, #tpu.memory_space<vmem>>, %arg20: memref<8x32xf32, #tpu.memory_space<vmem>>) attributes {dimension_semantics = [#tpu.dimension_semantics<parallel>], iteration_bounds = array<i64: 2>, scalar_prefetch = 0 : i64, scratch_operands = 2 : i64, tpu.core_type = #tpu.core_type<tc>, window_params = [{transform_indices = @transform_0, window_bounds = array<i64: 1, 8, 32>}, {transform_indices = @transform_1, window_bounds = array<i64: 1, 1, 32>}, {transform_indices = @transform_2, window_bounds = array<i64: 1, 1, 32>}, {transform_indices = @transform_3, window_bounds = array<i64: 1, 8, 1>}, {transform_indices = @transform_4, window_bounds = array<i64: 1, 1, 8>}, {pipeline_mode = #tpu.pipeline_mode<synchronous>, transform_indices = @transform_5, window_bounds = array<i64: 4, 32, 8>}, {pipeline_mode = #tpu.pipeline_mode<synchronous>, transform_indices = @transform_6, window_bounds = array<i64: 4, 1, 8>}, {pipeline_mode = #tpu.pipeline_mode<synchronous>, transform_indices = @transform_7, window_bounds = array<i64: 32, 32>}, {pipeline_mode = #tpu.pipeline_mode<synchronous>, transform_indices = @transform_8, window_bounds = array<i64: 32, 1>}, {pipeline_mode = #tpu.pipeline_mode<synchronous>, transform_indices = @transform_9, window_bounds = array<i64: 4, 32, 8>}, {pipeline_mode = #tpu.pipeline_mode<synchronous>, transform_indices = @transform_10, window_bounds = array<i64: 4, 1, 8>}, {pipeline_mode = #tpu.pipeline_mode<synchronous>, transform_indices = @transform_11, window_bounds = array<i64: 4, 8, 32>}, {pipeline_mode = #tpu.pipeline_mode<synchronous>, transform_indices = @transform_12, window_bounds = array<i64: 1, 32>}, {pipeline_mode = #tpu.pipeline_mode<synchronous>, transform_indices = @transform_13, window_bounds = array<i64: 2, 32>}, {pipeline_mode = #tpu.pipeline_mode<synchronous>, transform_indices = @transform_14, window_bounds = array<i64: 2, 32>}, {pipeline_mode = #tpu.pipeline_mode<synchronous>, transform_indices = @transform_15, window_bounds = array<i64: 2, 1>}, {transform_indices = @transform_16, window_bounds = array<i64: 1, 8, 32>}, {transform_indices = @transform_17, window_bounds = array<i64: 1, 2, 8>}]} {
    %c0 = arith.constant 0 : index
    %c0_0 = arith.constant 0 : index
    %c0_1 = arith.constant 0 : index
    %0 = vector.load %arg1[%c0, %c0_0, %c0_1] : memref<1x8x32xf32, #tpu.memory_space<vmem>>, vector<1x8x32xf32>
    %1 = vector.shape_cast %0 : vector<1x8x32xf32> to vector<8x32xf32>
    %c0_2 = arith.constant 0 : index
    %c0_3 = arith.constant 0 : index
    %c0_4 = arith.constant 0 : index
    %2 = vector.load %arg2[%c0_2, %c0_3, %c0_4] : memref<1x1x32xf32, #tpu.memory_space<vmem>>, vector<1x1x32xf32>
    %3 = vector.shape_cast %2 : vector<1x1x32xf32> to vector<1x32xf32>
    %c0_5 = arith.constant 0 : index
    %c0_6 = arith.constant 0 : index
    %c0_7 = arith.constant 0 : index
    %4 = vector.load %arg3[%c0_5, %c0_6, %c0_7] : memref<1x1x32xf32, #tpu.memory_space<vmem>>, vector<1x1x32xf32>
    %5 = vector.shape_cast %4 : vector<1x1x32xf32> to vector<1x32xf32>
    %c0_8 = arith.constant 0 : index
    %c0_9 = arith.constant 0 : index
    %c0_10 = arith.constant 0 : index
    %6 = vector.load %arg4[%c0_8, %c0_9, %c0_10] : memref<1x8x1xf32, #tpu.memory_space<vmem>>, vector<1x8x1xf32>
    %7 = vector.shape_cast %6 : vector<1x8x1xf32> to vector<8x1xf32>
    %cst = arith.constant dense<0.000000e+00> : vector<8xf32>
    %8 = vector.multi_reduction <add>, %1, %cst [1] : vector<8x32xf32> to vector<8xf32>
    %9 = vector.shape_cast %8 : vector<8xf32> to vector<8x1xf32>
    %cst_11 = arith.constant 3.200000e+01 : f32
    %10 = vector.broadcast %cst_11 : f32 to vector<8x1xf32>
    %11 = arith.divf %9, %10 : vector<8x1xf32>
    %12 = vector.broadcast %11 : vector<8x1xf32> to vector<8x32xf32>
    %13 = arith.subf %1, %12 : vector<8x32xf32>
    %14 = arith.mulf %13, %13 : vector<8x32xf32>
    %cst_12 = arith.constant dense<0.000000e+00> : vector<8xf32>
    %15 = vector.multi_reduction <add>, %14, %cst_12 [1] : vector<8x32xf32> to vector<8xf32>
    %16 = vector.shape_cast %15 : vector<8xf32> to vector<8x1xf32>
    %cst_13 = arith.constant 3.200000e+01 : f32
    %17 = vector.broadcast %cst_13 : f32 to vector<8x1xf32>
    %18 = arith.divf %16, %17 : vector<8x1xf32>
    %19 = vector.broadcast %11 : vector<8x1xf32> to vector<8x32xf32>
    %20 = arith.subf %1, %19 : vector<8x32xf32>
    %cst_14 = arith.constant 1.000000e-15 : f32
    %21 = vector.broadcast %cst_14 : f32 to vector<8x1xf32>
    %22 = arith.addf %18, %21 : vector<8x1xf32>
    %23 = math.rsqrt %22 : vector<8x1xf32>
    %24 = vector.broadcast %23 : vector<8x1xf32> to vector<8x32xf32>
    %25 = arith.mulf %20, %24 : vector<8x32xf32>
    %26 = vector.broadcast %3 : vector<1x32xf32> to vector<8x32xf32>
    %27 = arith.mulf %26, %25 : vector<8x32xf32>
    %28 = vector.broadcast %5 : vector<1x32xf32> to vector<8x32xf32>
    %29 = arith.addf %27, %28 : vector<8x32xf32>
    %30 = vector.broadcast %7 : vector<8x1xf32> to vector<8x32xf32>
    %31 = arith.mulf %29, %30 : vector<8x32xf32>
    %32 = arith.truncf %31 : vector<8x32xf32> to vector<8x32xbf16>
    %c0_15 = arith.constant 0 : index
    %c0_16 = arith.constant 0 : index
    %c0_17 = arith.constant 0 : index
    %33 = vector.load %arg17[%c0_15, %c0_16, %c0_17] : memref<1x8x32xbf16, #tpu.memory_space<vmem>>, vector<1x8x32xbf16>
    %34 = vector.shape_cast %33 : vector<1x8x32xbf16> to vector<8x32xbf16>
    %35 = vector.shape_cast %32 : vector<8x32xbf16> to vector<1x8x32xbf16>
    tpu.vector_store %arg17[%c0_15, %c0_16, %c0_17], %35 {strides = array<i32>} : memref<1x8x32xbf16, #tpu.memory_space<vmem>>, vector<1x8x32xbf16>,
    %36 = arith.truncf %31 : vector<8x32xf32> to vector<8x32xbf16>
    %c0_18 = arith.constant 0 : index
    %c0_19 = arith.constant 0 : index
    %c0_20 = arith.constant 0 : index
    %37 = vector.load %arg5[%c0_18, %c0_19, %c0_20] : memref<1x1x8xf32, #tpu.memory_space<vmem>>, vector<1x1x8xf32>
    %38 = vector.shape_cast %37 : vector<1x1x8xf32> to vector<1x8xf32>
    %c0_21 = arith.constant 0 : index
    %c0_22 = arith.constant 0 : index
    %39 = vector.load %arg8[%c0_21, %c0_22] : memref<32x32xbf16, #tpu.memory_space<vmem>>, vector<32x32xbf16>
    %cst_23 = arith.constant dense<0.000000e+00> : vector<32x8xf32>
    %40 = tpu.matmul %39, %36, %cst_23 {dimension_numbers = #tpu.dot_dimension_numbers<[1], [1], [0], [0], [0, 0, 1, 0], [], []>} : vector<32x32xbf16>, vector<8x32xbf16>, vector<32x8xf32> -> vector<32x8xf32>
    %c0_24 = arith.constant 0 : index
    %c0_25 = arith.constant 0 : index
    %41 = vector.load %arg9[%c0_24, %c0_25] : memref<32x1xf32, #tpu.memory_space<vmem>>, vector<32x1xf32>
    %42 = vector.broadcast %41 : vector<32x1xf32> to vector<32x8xf32>
    %43 = arith.addf %40, %42 : vector<32x8xf32>
    %c0_26 = arith.constant 0 : index
    %c0_27 = arith.constant 0 : index
    %44 = vector.load %arg19[%c0_26, %c0_27] : memref<32x8xf32, #tpu.memory_space<vmem>>, vector<32x8xf32>
    tpu.vector_store %arg19[%c0_26, %c0_27], %43 {strides = array<i32>} : memref<32x8xf32, #tpu.memory_space<vmem>>, vector<32x8xf32>,
    %c0_28 = arith.constant 0 : index
    %c0_29 = arith.constant 0 : index
    %45 = vector.load %arg13[%c0_28, %c0_29] : memref<1x32xf32, #tpu.memory_space<vmem>>, vector<1x32xf32>
    %46 = vector.shape_cast %45 : vector<1x32xf32> to vector<1x32xf32>
    %47 = vector.broadcast %46 : vector<1x32xf32> to vector<8x32xf32>
    %c0_30 = arith.constant 0 : index
    %c0_31 = arith.constant 0 : index
    %48 = vector.load %arg20[%c0_30, %c0_31] : memref<8x32xf32, #tpu.memory_space<vmem>>, vector<8x32xf32>
    tpu.vector_store %arg20[%c0_30, %c0_31], %47 {strides = array<i32>} : memref<8x32xf32, #tpu.memory_space<vmem>>, vector<8x32xf32>,
    %c0_i32 = arith.constant 0 : i32
    %c4_i32 = arith.constant 4 : i32
    %49 = arith.addi %c0_i32, %c4_i32 : i32
    %c1_i32 = arith.constant 1 : i32
    scf.for %arg21 = %c0_i32 to %49 step %c1_i32  : i32 {
      %c8_i32 = arith.constant 8 : i32
      %68 = arith.muli %arg21, %c8_i32 : i32
      %69 = tpu.assume_multiple %68, 8 : i32
      %70 = arith.index_cast %arg21 : i32 to index
      %c0_47 = arith.constant 0 : index
      %c0_48 = arith.constant 0 : index
      %71 = vector.load %arg6[%70, %c0_47, %c0_48] : memref<4x32x8xbf16, #tpu.memory_space<vmem>>, vector<1x32x8xbf16>
      %72 = vector.shape_cast %71 : vector<1x32x8xbf16> to vector<32x8xbf16>
      %cst_49 = arith.constant dense<0.000000e+00> : vector<8x8xf32>
      %73 = tpu.matmul %36, %72, %cst_49 {dimension_numbers = #tpu.dot_dimension_numbers<[1], [0], [0], [1], [0, 0, 1, 1], [], []>} : vector<8x32xbf16>, vector<32x8xbf16>, vector<8x8xf32> -> vector<8x8xf32>
      %74 = arith.index_cast %arg21 : i32 to index
      %c0_50 = arith.constant 0 : index
      %c0_51 = arith.constant 0 : index
      %75 = vector.load %arg7[%74, %c0_50, %c0_51] : memref<4x1x8xf32, #tpu.memory_space<vmem>>, vector<1x1x8xf32>
      %76 = vector.shape_cast %75 : vector<1x1x8xf32> to vector<1x8xf32>
      %77 = vector.broadcast %76 : vector<1x8xf32> to vector<8x8xf32>
      %78 = arith.addf %73, %77 : vector<8x8xf32>
      %79 = arith.truncf %78 : vector<8x8xf32> to vector<8x8xbf16>
      %80 = arith.index_cast %69 : i32 to index
      %c0_52 = arith.constant 0 : index
      %81 = vector.load %arg19[%80, %c0_52] : memref<32x8xf32, #tpu.memory_space<vmem>>, vector<8x8xf32>
      %82 = arith.truncf %81 : vector<8x8xf32> to vector<8x8xbf16>
      %cst_53 = arith.constant dense<0.000000e+00> : vector<8x8xf32>
      %83 = tpu.matmul %79, %82, %cst_53 {dimension_numbers = #tpu.dot_dimension_numbers<[1], [0], [0], [1], [0, 0, 1, 1], [], []>} : vector<8x8xbf16>, vector<8x8xbf16>, vector<8x8xf32> -> vector<8x8xf32>
      %84 = vector.broadcast %38 : vector<1x8xf32> to vector<8x8xf32>
      %85 = arith.addf %83, %84 : vector<8x8xf32>
      %cst_54 = arith.constant dense<0xFF800000> : vector<8xf32>
      %86 = vector.multi_reduction <maximumf>, %85, %cst_54 [1] : vector<8x8xf32> to vector<8xf32>
      %87 = vector.shape_cast %86 : vector<8xf32> to vector<8x1xf32>
      %88 = vector.broadcast %87 : vector<8x1xf32> to vector<8x8xf32>
      %89 = arith.subf %85, %88 : vector<8x8xf32>
      %90 = math.exp %89 : vector<8x8xf32>
      %cst_55 = arith.constant dense<0.000000e+00> : vector<8xf32>
      %91 = vector.multi_reduction <add>, %90, %cst_55 [1] : vector<8x8xf32> to vector<8xf32>
      %92 = vector.shape_cast %91 : vector<8xf32> to vector<8x1xf32>
      %93 = tpu.reciprocal %92 {approx = true} : vector<8x1xf32> -> vector<8x1xf32>
      %94 = vector.broadcast %93 : vector<8x1xf32> to vector<8x8xf32>
      %95 = arith.mulf %90, %94 : vector<8x8xf32>
      %96 = arith.index_cast %arg21 : i32 to index
      %c0_56 = arith.constant 0 : index
      %c0_57 = arith.constant 0 : index
      %97 = vector.load %arg10[%96, %c0_56, %c0_57] : memref<4x32x8xbf16, #tpu.memory_space<vmem>>, vector<1x32x8xbf16>
      %98 = vector.shape_cast %97 : vector<1x32x8xbf16> to vector<32x8xbf16>
      %cst_58 = arith.constant dense<0.000000e+00> : vector<8x8xf32>
      %99 = tpu.matmul %36, %98, %cst_58 {dimension_numbers = #tpu.dot_dimension_numbers<[1], [0], [0], [1], [0, 0, 1, 1], [], []>} : vector<8x32xbf16>, vector<32x8xbf16>, vector<8x8xf32> -> vector<8x8xf32>
      %100 = arith.index_cast %arg21 : i32 to index
      %c0_59 = arith.constant 0 : index
      %c0_60 = arith.constant 0 : index
      %101 = vector.load %arg11[%100, %c0_59, %c0_60] : memref<4x1x8xf32, #tpu.memory_space<vmem>>, vector<1x1x8xf32>
      %102 = vector.shape_cast %101 : vector<1x1x8xf32> to vector<1x8xf32>
      %103 = vector.broadcast %102 : vector<1x8xf32> to vector<8x8xf32>
      %104 = arith.addf %99, %103 : vector<8x8xf32>
      %105 = arith.truncf %104 : vector<8x8xf32> to vector<8x8xbf16>
      %106 = arith.truncf %95 : vector<8x8xf32> to vector<8x8xbf16>
      %cst_61 = arith.constant dense<0.000000e+00> : vector<8x8xf32>
      %107 = tpu.matmul %106, %105, %cst_61 {dimension_numbers = #tpu.dot_dimension_numbers<[1], [0], [0], [1], [0, 0, 1, 1], [], []>} : vector<8x8xbf16>, vector<8x8xbf16>, vector<8x8xf32> -> vector<8x8xf32>
      %c0_62 = arith.constant 0 : index
      %c0_63 = arith.constant 0 : index
      %108 = vector.load %arg20[%c0_62, %c0_63] : memref<8x32xf32, #tpu.memory_space<vmem>>, vector<8x32xf32>
      %109 = arith.truncf %107 : vector<8x8xf32> to vector<8x8xbf16>
      %110 = arith.index_cast %arg21 : i32 to index
      %c0_64 = arith.constant 0 : index
      %c0_65 = arith.constant 0 : index
      %111 = vector.load %arg12[%110, %c0_64, %c0_65] : memref<4x8x32xbf16, #tpu.memory_space<vmem>>, vector<1x8x32xbf16>
      %112 = vector.shape_cast %111 : vector<1x8x32xbf16> to vector<8x32xbf16>
      %cst_66 = arith.constant dense<0.000000e+00> : vector<8x32xf32>
      %113 = tpu.matmul %109, %112, %cst_66 {dimension_numbers = #tpu.dot_dimension_numbers<[1], [0], [0], [1], [0, 0, 1, 1], [], []>} : vector<8x8xbf16>, vector<8x32xbf16>, vector<8x32xf32> -> vector<8x32xf32>
      %114 = arith.addf %108, %113 : vector<8x32xf32>
      %c0_67 = arith.constant 0 : index
      %c0_68 = arith.constant 0 : index
      %115 = vector.load %arg20[%c0_67, %c0_68] : memref<8x32xf32, #tpu.memory_space<vmem>>, vector<8x32xf32>
      tpu.vector_store %arg20[%c0_67, %c0_68], %114 {strides = array<i32>} : memref<8x32xf32, #tpu.memory_space<vmem>>, vector<8x32xf32>,
    }
    %c4_i32_32 = arith.constant 4 : i32
    %c0_33 = arith.constant 0 : index
    %c0_34 = arith.constant 0 : index
    %50 = vector.load %arg20[%c0_33, %c0_34] : memref<8x32xf32, #tpu.memory_space<vmem>>, vector<8x32xf32>
    %51 = arith.truncf %50 : vector<8x32xf32> to vector<8x32xbf16>
    %c0_35 = arith.constant 0 : index
    %c0_36 = arith.constant 0 : index
    %52 = vector.load %arg14[%c0_35, %c0_36] : memref<2x32xbf16, #tpu.memory_space<vmem>>, vector<2x32xbf16>
    %cst_37 = arith.constant dense<0.000000e+00> : vector<2x8xf32>
    %53 = tpu.matmul %52, %36, %cst_37 {dimension_numbers = #tpu.dot_dimension_numbers<[1], [1], [0], [0], [0, 0, 1, 0], [], []>} : vector<2x32xbf16>, vector<8x32xbf16>, vector<2x8xf32> -> vector<2x8xf32>
    %c0_38 = arith.constant 0 : index
    %c0_39 = arith.constant 0 : index
    %54 = vector.load %arg15[%c0_38, %c0_39] : memref<2x32xbf16, #tpu.memory_space<vmem>>, vector<2x32xbf16>
    %cst_40 = arith.constant dense<0.000000e+00> : vector<2x8xf32>
    %55 = tpu.matmul %54, %51, %cst_40 {dimension_numbers = #tpu.dot_dimension_numbers<[1], [1], [0], [0], [0, 0, 1, 0], [], []>} : vector<2x32xbf16>, vector<8x32xbf16>, vector<2x8xf32> -> vector<2x8xf32>
    %56 = arith.addf %53, %55 : vector<2x8xf32>
    %c0_41 = arith.constant 0 : index
    %c0_42 = arith.constant 0 : index
    %57 = vector.load %arg16[%c0_41, %c0_42] : memref<2x1xf32, #tpu.memory_space<vmem>>, vector<2x1xf32>
    %58 = vector.broadcast %57 : vector<2x1xf32> to vector<2x8xf32>
    %59 = arith.addf %56, %58 : vector<2x8xf32>
    %60 = arith.negf %59 : vector<2x8xf32>
    %61 = math.exp %60 : vector<2x8xf32>
    %cst_43 = arith.constant 1.000000e+00 : f32
    %62 = vector.broadcast %cst_43 : f32 to vector<2x8xf32>
    %63 = arith.addf %62, %61 : vector<2x8xf32>
    %64 = arith.divf %62, %63 : vector<2x8xf32>
    %c0_44 = arith.constant 0 : index
    %c0_45 = arith.constant 0 : index
    %c0_46 = arith.constant 0 : index
    %65 = vector.load %arg18[%c0_44, %c0_45, %c0_46] : memref<1x2x8xf32, #tpu.memory_space<vmem>>, vector<1x2x8xf32>
    %66 = vector.shape_cast %65 : vector<1x2x8xf32> to vector<2x8xf32>
    %67 = vector.shape_cast %64 : vector<2x8xf32> to vector<1x2x8xf32>
    tpu.vector_store %arg18[%c0_44, %c0_45, %c0_46], %67 {strides = array<i32>} : memref<1x2x8xf32, #tpu.memory_space<vmem>>, vector<1x2x8xf32>,
    return
  }
  func.func @transform_0(%arg0: i32) -> (i32, i32, i32) {
    %c0_i32 = arith.constant 0 : i32
    %c0_i32_0 = arith.constant 0 : i32
    %c0_i32_1 = arith.constant 0 : i32
    return %arg0, %c0_i32, %c0_i32_0 : i32, i32, i32
  }
  func.func @transform_1(%arg0: i32) -> (i32, i32, i32) {
    %c0_i32 = arith.constant 0 : i32
    %c0_i32_0 = arith.constant 0 : i32
    %c0_i32_1 = arith.constant 0 : i32
    return %arg0, %c0_i32, %c0_i32_0 : i32, i32, i32
  }
  func.func @transform_2(%arg0: i32) -> (i32, i32, i32) {
    %c0_i32 = arith.constant 0 : i32
    %c0_i32_0 = arith.constant 0 : i32
    %c0_i32_1 = arith.constant 0 : i32
    return %arg0, %c0_i32, %c0_i32_0 : i32, i32, i32
  }
  func.func @transform_3(%arg0: i32) -> (i32, i32, i32) {
    %c0_i32 = arith.constant 0 : i32
    %c0_i32_0 = arith.constant 0 : i32
    %c0_i32_1 = arith.constant 0 : i32
    return %arg0, %c0_i32, %c0_i32_0 : i32, i32, i32
  }
  func.func @transform_4(%arg0: i32) -> (i32, i32, i32) {
    %c0_i32 = arith.constant 0 : i32
    %c0_i32_0 = arith.constant 0 : i32
    %c0_i32_1 = arith.constant 0 : i32
    return %arg0, %c0_i32, %c0_i32_0 : i32, i32, i32
  }
  func.func @transform_5(%arg0: i32) -> (i32, i32, i32) {
    %c0_i32 = arith.constant 0 : i32
    %c0_i32_0 = arith.constant 0 : i32
    %c0_i32_1 = arith.constant 0 : i32
    %c0_i32_2 = arith.constant 0 : i32
    return %c0_i32, %c0_i32_0, %c0_i32_1 : i32, i32, i32
  }
  func.func @transform_6(%arg0: i32) -> (i32, i32, i32) {
    %c0_i32 = arith.constant 0 : i32
    %c0_i32_0 = arith.constant 0 : i32
    %c0_i32_1 = arith.constant 0 : i32
    %c0_i32_2 = arith.constant 0 : i32
    return %c0_i32, %c0_i32_0, %c0_i32_1 : i32, i32, i32
  }
  func.func @transform_7(%arg0: i32) -> (i32, i32) {
    %c0_i32 = arith.constant 0 : i32
    %c0_i32_0 = arith.constant 0 : i32
    %c0_i32_1 = arith.constant 0 : i32
    return %c0_i32, %c0_i32_0 : i32, i32
  }
  func.func @transform_8(%arg0: i32) -> (i32, i32) {
    %c0_i32 = arith.constant 0 : i32
    %c0_i32_0 = arith.constant 0 : i32
    %c0_i32_1 = arith.constant 0 : i32
    return %c0_i32, %c0_i32_0 : i32, i32
  }
  func.func @transform_9(%arg0: i32) -> (i32, i32, i32) {
    %c0_i32 = arith.constant 0 : i32
    %c0_i32_0 = arith.constant 0 : i32
    %c0_i32_1 = arith.constant 0 : i32
    %c0_i32_2 = arith.constant 0 : i32
    return %c0_i32, %c0_i32_0, %c0_i32_1 : i32, i32, i32
  }
  func.func @transform_10(%arg0: i32) -> (i32, i32, i32) {
    %c0_i32 = arith.constant 0 : i32
    %c0_i32_0 = arith.constant 0 : i32
    %c0_i32_1 = arith.constant 0 : i32
    %c0_i32_2 = arith.constant 0 : i32
    return %c0_i32, %c0_i32_0, %c0_i32_1 : i32, i32, i32
  }
  func.func @transform_11(%arg0: i32) -> (i32, i32, i32) {
    %c0_i32 = arith.constant 0 : i32
    %c0_i32_0 = arith.constant 0 : i32
    %c0_i32_1 = arith.constant 0 : i32
    %c0_i32_2 = arith.constant 0 : i32
    return %c0_i32, %c0_i32_0, %c0_i32_1 : i32, i32, i32
  }
  func.func @transform_12(%arg0: i32) -> (i32, i32) {
    %c0_i32 = arith.constant 0 : i32
    %c0_i32_0 = arith.constant 0 : i32
    %c0_i32_1 = arith.constant 0 : i32
    return %c0_i32, %c0_i32_0 : i32, i32
  }
  func.func @transform_13(%arg0: i32) -> (i32, i32) {
    %c0_i32 = arith.constant 0 : i32
    %c0_i32_0 = arith.constant 0 : i32
    %c0_i32_1 = arith.constant 0 : i32
    return %c0_i32, %c0_i32_0 : i32, i32
  }
  func.func @transform_14(%arg0: i32) -> (i32, i32) {
    %c0_i32 = arith.constant 0 : i32
    %c0_i32_0 = arith.constant 0 : i32
    %c0_i32_1 = arith.constant 0 : i32
    return %c0_i32, %c0_i32_0 : i32, i32
  }
  func.func @transform_15(%arg0: i32) -> (i32, i32) {
    %c0_i32 = arith.constant 0 : i32
    %c0_i32_0 = arith.constant 0 : i32
    %c0_i32_1 = arith.constant 0 : i32
    return %c0_i32, %c0_i32_0 : i32, i32
  }
  func.func @transform_16(%arg0: i32) -> (i32, i32, i32) {
    %c0_i32 = arith.constant 0 : i32
    %c0_i32_0 = arith.constant 0 : i32
    %c0_i32_1 = arith.constant 0 : i32
    return %arg0, %c0_i32, %c0_i32_0 : i32, i32, i32
  }
  func.func @transform_17(%arg0: i32) -> (i32, i32, i32) {
    %c0_i32 = arith.constant 0 : i32
    %c0_i32_0 = arith.constant 0 : i32
    %c0_i32_1 = arith.constant 0 : i32
    return %arg0, %c0_i32, %c0_i32_0 : i32, i32, i32
  }
}

</mosaic_0001>

<bundles_post_ra>
// kernel: tpu_custom_call.1
= control target key start
LH: loop header
LB: loop body
LE: loop exit
PB: predicated region body
PF: predicated region fallthrough
CT: control target
= control target key end

     0   :  { %6 = vsyncpa [#allocation3], 0  ;;  %s340_s0 = inlined_call_operand.hbm [shape: f32[8,128], index: 0, kind: input, shape index: {}]   ;;  %s341_s1 = inlined_call_operand.hbm [shape: f32[8,128], index: 1, kind: output, shape index: {}]  }
   0x1   :  { %7 = vsyncpa [#allocation4], 0  ;;  %s261_s6 = smov 0  }
   0x2 LB: > { %s144_s7 = sadd.s32 4294967295, %s247_s6   ;;  %p145_p0 = scmp.ge.s32.totalorder %s247_s6, 1  ;;  %s247_s6 = sphi %s261_s6, %s13_s6  }
   0x3   : > { %p60_p1 = scmp.lt.s32.totalorder %s247_s6, 3  ;;  %p275_p3 = scmp.eq.s32.totalorder %s144_s7, 0 }
   0x4   : > { %s249_s10 = smov [#allocation2]   ;;  %s179_s15 = scalar_lea.hbm %s340_s0, 128 }
   0x5   : > { %p269_p2 = pnand %p145_p0, %p60_p1  ;;  %s73_s11 = sshll.u32 %s249_s10, 4  ;;  %s74_s11 = int_to_ptr.vmem [resolvable:$true] %s73_s11 }
   0x6   : > { %s346_s9 = scalar_select %p275_p3, 1, 0 }
   0x7   : > { %s345_s8 = scalar_select %p269_p2, 1, 0 }
   0x8   : > { %p161_p4 = pneg %p269_p2  ;;  %p180_p6 = scmp.ne.s32.totalorder %s340_s0, %s179_s15 }
   0x9   : > { %p186_p10 = scmp.lt.u32.totalorder %s179_s15, %s340_s0 }
   0xa   : > { %p283_p5 = pnand %p275_p3, %p161_p4 }
   0xc   : > { %p181_p7 = pneg %p283_p5 }
   0xe   : > { %p182_p8 = pnand %p181_p7, %p180_p6 }
  0x10   : > { %p183_p9 = pneg %p182_p8 }
  0x12   : > { %p188_p11 = pnand %p186_p10, %p183_p9 }
  0x14   : > { %191 = shalt.err (!%p188_p11)
}
  0x15   : > { %s192_s20 = scalar_lea.vmem %s74_s11, 128  ;;  %p200_p1 = scmp.lt.s32.totalorder %s74_s11, %s74_s11 }
  0x16   : > { %p193_p12 = scmp.ne.s32.totalorder %s74_s11, %s192_s20  ;;  %p201_p4 = scmp.lt.s32.totalorder %s192_s20, %s192_s20 }
  0x18   : > { %p195_p13 = pnand %p193_p12, %p181_p7  ;;  %p202_p3 = por %p201_p4, %p200_p1 }
  0x1a   : > { %p196_p0 = pneg %p195_p13 }
  0x1c   : > { %p203_p2 = pnand %p202_p3, %p196_p0 }
  0x1e   : > { %206 = shalt.err (!%p203_p2)
}
  0x1f   : > { %164 = dma.hbm_to_vmem [thread:$0]  (!%p283_p5), %s340_s0, 128, %s74_s11, [#allocation3]  }
  0x20   : > { %p348_p6 = scmp.ne.s32.totalorder %s345_s8, 0 }
  0x21   : > { %p349_p8 = scmp.ne.s32.totalorder (!%p348_p6), %s346_s9, 0 }
  0x22   : > { %86 = sbr.rel (%p348_p6) target bundleno = 67 (0x43), region = 24 }
  0x29   : > { %238 = dma.done.wait (%p349_p8), [#allocation3], 128  }
  0x2a   : > { %240 = vsyncadd (%p349_p8), [#allocation3], 4294967168  ;;  %s250_s23 = smov [#allocation5]   ;;  %p311_p2 = scmp.eq.s32.totalorder %s144_s7, 1  ;;  %v96_v0 = vld [vmem:[#allocation2] sm:$0xff] }
  0x2b   : > { %s105_s24 = sshll.u32 %s250_s23, 4  ;;  %97 = vst [vmem:[#allocation5] sm:$0xff] %v96_v0  ;;  %s106_s24 = int_to_ptr.vmem [resolvable:$true] %s105_s24 }
  0x2c   : > { %s207_s26 = scalar_lea.vmem %s106_s24, 128  ;;  %p214_p9 = scmp.lt.s32.totalorder %s106_s24, %s106_s24 }
  0x2d   : > { %p208_p3 = scmp.ne.s32.totalorder %s106_s24, %s207_s26  ;;  %p215_p10 = scmp.lt.s32.totalorder %s207_s26, %s207_s26 }
  0x2f   : > { %p209_p5 = pnand %p208_p3, %p311_p2  ;;  %p216_p11 = por %p215_p10, %p214_p9 }
  0x31   : > { %p210_p7 = pneg %p209_p5 }
  0x33   : > { %p217_p12 = pnand %p216_p11, %p210_p7 }
  0x35   : > { %220 = shalt.err (!%p217_p12)
}
  0x36   : > { %s221_s29 = scalar_lea.hbm %s341_s1, 128 }
  0x37   : > { %p222_p13 = scmp.ne.s32.totalorder %s341_s1, %s221_s29  ;;  %p227_p4 = scmp.lt.u32.totalorder %s221_s29, %s341_s1 }
  0x39   : > { %p223_p0 = pnand %p222_p13, %p311_p2 }
  0x3b   : > { %p224_p1 = pneg %p223_p0 }
  0x3d   : > { %p229_p6 = pnand %p227_p4, %p224_p1 }
  0x3f   : > { %232 = shalt.err (!%p229_p6)
}
  0x40   : > { %158 = dma.vmem_to_hbm [thread:$0]  (%p311_p2), %s106_s24, 128, %s341_s1, [#allocation4]  }
  0x41   : > { %242 = dma.done.wait (%p311_p2), [#allocation4], 128  }
  0x42   : > { %244 = vsyncadd (%p311_p2), [#allocation4], 4294967168 }
  0x43 PF: > { %s13_s6 = sadd.s32 1, %s247_s6  }
  0x44   : > { %p10_p8 = scmp.ge.s32.totalorder %s13_s6, 4  }
  0x46   :  { %12 = sbr.rel (!%p10_p8) target bundleno = 2 (0x2), region = 53 }
  0x4d   :  { %118 = vsyncpa [#allocation3], 1 }
  0x4e   :  { %120 = vsyncpa [#allocation3 + $0x1], 1 }
  0x4f   :  { %121 = vsyncpa [#allocation4], 1 }
  0x50   :  { %123 = vsyncpa [#allocation4 + $0x1], 1 }

// kernel: tpu_custom_call.1
= control target key start
LH: loop header
LB: loop body
LE: loop exit
PB: predicated region body
PF: predicated region fallthrough
CT: control target
= control target key end

     0   :  { %s2015_s0 = inlined_call_operand.vmem [shape: f32[2,8,32], index: 0, kind: input, shape index: {}]   ;;  %s2016_s1 = inlined_call_operand.vmem [shape: f32[2,1,32], index: 1, kind: input, shape index: {}]   ;;  %s2017_s2 = inlined_call_operand.vmem [shape: f32[2,1,32], index: 2, kind: input, shape index: {}]   ;;  %s2018_s3 = inlined_call_operand.vmem [shape: f32[2,8,1], index: 3, kind: input, shape index: {}]   ;;  %s2019_s4 = inlined_call_operand.vmem [shape: f32[2,1,8], index: 4, kind: input, shape index: {}]   ;;  %s2020_s5 = inlined_call_operand.vmem [shape: bf16[4,32,8], index: 5, kind: input, shape index: {}]   ;;  %s2021_s6 = inlined_call_operand.vmem [shape: f32[4,1,8], index: 6, kind: input, shape index: {}]   ;;  %s2022_s7 = inlined_call_operand.vmem [shape: bf16[32,32], index: 7, kind: input, shape index: {}]   ;;  %s2023_s8 = inlined_call_operand.vmem [shape: f32[32,1], index: 8, kind: input, shape index: {}]   ;;  %s2024_s9 = inlined_call_operand.vmem [shape: bf16[4,32,8], index: 9, kind: input, shape index: {}]   ;;  %s2025_s10 = inlined_call_operand.vmem [shape: f32[4,1,8], index: 10, kind: input, shape index: {}]   ;;  %s2026_s11 = inlined_call_operand.vmem [shape: bf16[4,8,32], index: 11, kind: input, shape index: {}]   ;;  %s2027_s12 = inlined_call_operand.vmem [shape: f32[1,32], index: 12, kind: input, shape index: {}]   ;;  %s2028_s13 = inlined_call_operand.vmem [shape: bf16[2,32], index: 13, kind: input, shape index: {}]   ;;  %s2029_s14 = inlined_call_operand.vmem [shape: bf16[2,32], index: 14, kind: input, shape index: {}]   ;;  %s2030_s15 = inlined_call_operand.vmem [shape: f32[2,1], index: 15, kind: input, shape index: {}]   ;;  %s2031_s16 = inlined_call_operand.hbm [shape: bf16[2,8,32], index: 16, kind: output, shape index: {0}]   ;;  %s2032_s17 = inlined_call_operand.hbm [shape: f32[2,2,8], index: 17, kind: output, shape index: {1}]  }
   0x1   :  { %2038 = sst [smem:[#allocation15_spill]] %s2015_s0 }
   0x2   :  { %2039 = sst [smem:[#allocation16_spill]] %s2016_s1 }
   0x3   :  { %2040 = sst [smem:[#allocation17_spill]] %s2017_s2 }
   0x4   :  { %2041 = sst [smem:[#allocation18_spill]] %s2018_s3 }
   0x5   :  { %2042 = sst [smem:[#allocation19_spill]] %s2027_s12 }
   0x6   :  { %23 = vsyncpa [#allocation5], 0 }
   0x7   :  { %25 = vsyncpa [#allocation5 + $0x1], 0 }
   0x8   :  { %26 = vsyncpa [#allocation7], 0 }
   0x9   :  { %28 = vsyncpa [#allocation7 + $0x1], 0  ;;  %s1753_s24 = smov 0   ;;  %s1755_s25 = smov 0  }
   0xa   :  { %s1757_s26 = smov 0   ;;  %s1759_s27 = smov 0  }
   0xb LB: > { %2043 = sst [smem:[#allocation10_spill]] %s1638_s24  ;;  %s1774_s28 = sadd.s32 4294967295, %s1650_s27   ;;  %s1650_s27 = sphi %s1759_s27, %s2058_s27   ;;  %s1646_s26 = sphi %s1757_s26, %s2060_s26   ;;  %s1642_s25 = sphi %s1755_s25, %s2062_s25   ;;  %s1638_s24 = sphi %s1753_s24, %s2061_s24  }
   0xc   : > { %2044 = sst [smem:[#allocation11_spill]] %s1646_s26  ;;  %s1361_s29 = sadd.s32 4294967294, %s1650_s27  }
   0xd   : > { %s1778_s0 = sadd.s32 1, %s1650_s27   ;;  %s402_s30 = sadd.s32 1, %s1646_s26 }
   0xe   : > { %2045 = sst [smem:[#allocation12_spill]] %s1778_s0  ;;  %s399_s18 = ssub.s32 %s1650_s27, %s1778_s0 }
   0xf   : > { %p412_p0 = scmp.ne.s32.totalorder %s1646_s26, %s1642_s25  ;;  %p400_p1 = scmp.eq.s32.totalorder %s399_s18, 0 }
  0x10   : > { %p413_p2 = scmp.eq.s32.totalorder %s1774_s28, 1  ;;  %p418_p3 = scmp.ne.s32.totalorder %s1642_s25, %s1638_s24 }
  0x11   : > { %p419_p4 = scmp.eq.s32.totalorder %s1361_s29, 1  ;;  %p1364_p7 = scmp.ge.s32.totalorder %s1650_s27, 1 }
  0x12   : > { %s1789_s19 = scalar_select %p400_p1, %s1646_s26, %s402_s30  }
  0x13   : > { %p1791_p5 = por %p413_p2, %p412_p0  ;;  %p1795_p6 = por %p419_p4, %p418_p3 }
  0x14   : > { %2046 = sst [smem:[#allocation13_spill]] %s1789_s19  ;;  %p528_p8 = scmp.lt.s32.totalorder %s1650_s27, 3 }
  0x15   : > { %s2048_s20 = scalar_select %p1795_p6, 1, 0 }
  0x16   : > { %p529_p9 = pnand %p1364_p7, %p528_p8 }
  0x17   : > { %2049 = sst [smem:[#allocation14_spill]] %s2048_s20  ;;  %p597_p10 = scmp.lt.s32.totalorder (!%p529_p9), %s1774_s28, 1  ;;  %vm619_vm0 = vcmask (!%p529_p9), 261120   ;;  %v1656_v4 = vmov (!%p529_p9), 0   ;;  %v662_v6 = vld [vmem:[%s2023_s8] sm:$0xff] (!%p529_p9)  ;;  %v664_v7 = vld [vmem:[%s2023_s8 + $0x10] sm:$0xff] (!%p529_p9) }
  0x18   : > { %532 = sbr.rel (%p529_p9) target bundleno = 2037 (0x7f5), region = 84  ;;  %s2050_s12 = sld [smem:[#allocation19_spill]] (!%p529_p9)  ;;  %1533 = vset.pattern.permute.xlu1 (!%p529_p9), %v1656_v4  ;;  %1534 = vset.pattern.permute.xlu0 (!%p529_p9), %v1656_v4  ;;  %v665_v8 = vld [vmem:[%s2023_s8 + $0x18] sm:$0xff] (!%p529_p9)  ;;  %v1535_v14 = vld [vmem:[%s2022_s7] sm:$0xff] (!%p529_p9)   ;;  %v663_v15 = vld [vmem:[%s2023_s8 + $0x8] sm:$0xff] (!%p529_p9)  ;;  %vm655_vm1 = vcmask (!%p529_p9), 257024  }
  0x19   : > { %s2051_s20 = sld [smem:[#allocation15_spill]] (!%p529_p9)  ;;  %s2052_s3 = sld [smem:[#allocation18_spill]] (!%p529_p9)  ;;  %1425 = vmatprep.mubr.msk.bf16.mxu0 (!%p529_p9), %vm619_vm0, %v1535_v14  ;;  %v1536_v29 = vld [vmem:[%s2022_s7 + $0x8] sm:$0xff] (!%p529_p9)   ;;  %vm754_vm2 = vcmask (!%p529_p9), 64512  }
  0x1a   : > { %s2054_s2 = sld [smem:[#allocation17_spill]] (!%p529_p9) }
  0x1e   : > { %v1375_v0 = vld [vmem:[%s2050_s12] ss:$0 sm:$0xff] (!%p529_p9) }
  0x1f   : > { %766 = vst.msk [vmem:[#allocation3] sm:$0xff] %vm619_vm0, %v1375_v0  ;;  %s1807_s23 = scalar_select %p597_p10, %s1774_s28, 1 }
  0x21   : > { %s1367_s29 = sshll.u32 %s1807_s23, 3  ;;  %s613_s19 = scalar_lea.vmem %s2019_s4, %s1807_s23 }
  0x22   : > { %s600_s24 = scalar_lea.vmem %s2051_s20, %s1367_s29  ;;  %v1817_v1 = vld [vmem:[%s613_s19] ss:$0 sm:$0xff]  ;;  %s610_s12 = scalar_lea.vmem %s2052_s3, %s1367_s29 }
  0x23   : > { %v615_v2 = vld [vmem:[%s600_s24] sm:$0xff]  ;;  %s2053_s19 = sld [smem:[#allocation16_spill]]  ;;  %s606_s18 = scalar_lea.vmem %s2054_s2, %s1807_s23 }
  0x24   : > { %v620_v3 = vsel %vm619_vm0, %v615_v2, 0.0  ;;  %v618_v5 = vld [vmem:[%s610_s12] sm:$0xff]  ;;  %s1836_s12 = sand.u32 1, %s1642_s25   ;;  %s1880_s24 = smov 0  }
  0x25   : > { %621 = vadd.xlane.f32.xlu0 %v620_v3  ;;  %650 = vperm.xlu1 %1533, %v618_v5   ;;  %v1370_v22 = vld [vmem:[%s606_s18] ss:$0 sm:$0xff]  ;;  %s1365_s21 = sshll.u32 %s1836_s12, 2  ;;  %s2055_s26 = sshll.u32 %s1836_s12, 1 }
  0x26   : > { %s1857_s22 = scalar_lea.vmem [#allocation4], %s1365_s21  ;;  %s1878_s0 = scalar_lea.vmem [#allocation6], %s2055_s26 }
  0x29   : > { %668 = vperm.xlu1 %1533, %v662_v6   ;;  %s603_s20 = scalar_lea.vmem %s2053_s19, %s1807_s23 }
  0x2a   : > { %v1369_v20 = vld [vmem:[%s603_s20] ss:$0 sm:$0xff] }
  0x2d   : > { %678 = vperm.xlu1 %1533, %v664_v7  }
  0x31   : > { %683 = vperm.xlu1 %1533, %v665_v8  }
  0xa4   : > { %v651_v25 = vpop.permute.xlu1 %650 }
  0xa8   : > { %v669_v30 = vpop.permute.xlu1 %668 }
  0xac   : > { %v679_v31 = vpop.permute.xlu1 %678 }
  0xb0   : > { %v684_v36 = vpop.permute.xlu1 %683 }
  0xb2   : > { %v622_v9 = vpop.xlane.xlu0 %621 }
  0xb3   : > { %v624_v10 = vmul.f32 0.03125, %v622_v9 }
  0xb5   : > { %v625_v11 = vsub.f32 %v615_v2, %v624_v10 }
  0xb7   : > { %v626_v12 = vmul.f32 %v625_v11, %v625_v11 }
  0xb9   : > { %v627_v13 = vsel %vm619_vm0, %v626_v12, 0.0 }
  0xba   : > { %628 = vadd.xlane.f32.xlu0 %v627_v13 }
  0xd0   : > { %673 = vperm.xlu0 %1534, %v663_v15  }
 0x147   : > { %v629_v16 = vpop.xlane.xlu0 %628 }
 0x148   : > { %v630_v17 = vmul.f32 0.03125, %v629_v16 }
 0x14a   : > { %v631_v18 = vadd.f32 1e-15, %v630_v17 }
 0x14c   : > { %1537 = vrsqrt.f32 %v631_v18 }
 0x14f   : > { %v674_v35 = vpop.permute.xlu0 %673 }
 0x156   : > { %v1538_v19 = vpop.eup %1537 }
 0x157   : > { %v633_v21 = vmul.f32 %v1538_v19, %v625_v11 }
 0x159   : > { %v640_v23 = vmul.f32 %v1369_v20, %v633_v21 }
 0x15b   : > { %v647_v24 = vadd.f32 %v1370_v22, %v640_v23 }
 0x15d   : > { %v653_v26 = vmul.f32 %v651_v25, %v647_v24 }
 0x15f   : > { %v1855_v27 = vpack.c.bf16 %v653_v26, %v653_v26 }
 0x161   : > { %656 = vst.msk [vmem:[%s1857_s22] sm:$0xf] %vm655_vm1, %v1855_v27  ;;  %1475 = vmatprep.subr.msk.bf16.mxu0 %vm619_vm0, %v1855_v27  ;;  %v1865_v28 = vsel %vm619_vm0, %v1855_v27, 0 }
 0x162   : > { %1424 = vmatpush3.bf16.xpose.msra.mxu0 %v1865_v28 }
 0x169   : > { %1426 = vmatmul.mubr.msk.bf16.vlgmr.msra.gmra.mrb[0].mxu0 %vm619_vm0, %v1536_v29 }
 0x23c   : > { %v1427_v32 = vpop.f32.mrb[0].mxu0 }
 0x23d   : > { %v748_v33 = vadd.f32 %v1427_v32, %v679_v31  ;;  %v739_v34 = vpop.f32.mrb[1].mxu0 }
 0x23e   : > { %v740_v37 = vadd.f32 %v739_v34, %v669_v30  ;;  %v1428_v38 = vpop.f32.mrb[2].mxu0 }
 0x23f   : > { %757 = vst.msk [vmem:[#allocation2 + $0x10] sm:$0xff] %vm754_vm2, %v748_v33  ;;  %v751_v39 = vadd.f32 %v1428_v38, %v684_v36  ;;  %v742_v40 = vpop.f32.mrb[3].mxu0 }
 0x240   : > { %755 = vst.msk [vmem:[#allocation2] sm:$0xff] %vm754_vm2, %v740_v37  ;;  %v743_v41 = vadd.f32 %v742_v40, %v674_v35 }
 0x241   : > { %758 = vst.msk [vmem:[#allocation2 + $0x18] sm:$0xff] %vm754_vm2, %v751_v39 }
 0x242   : > { %756 = vst.msk [vmem:[#allocation2 + $0x8] sm:$0xff] %vm754_vm2, %v743_v41 }
 0x243 LB: >> { %v1657_v42 = vmov 0.0   ;;  %vm1658_vm3 = vmmov 0   ;;  %s1402_s19 = sshll.u32 %s1654_s24, 4  ;;  %s1376_s26 = sshll.u32 %s1654_s24, 3  ;;  %vm854_vm4 = vcmask 1043456   ;;  %v1023_v25 = vld [vmem:[#allocation3] sm:$0xff]  ;;  %s1654_s24 = sphi %s1880_s24, %s772_s24  }
 0x244   : >> { %1429 = vmatprep.subr.bf16.mxu0 %v1657_v42  ;;  %1433 = vmatprep.mubr.msk.bf16.mxu0 %vm1658_vm3, %v1657_v42  ;;  %s776_s18 = scalar_lea.vmem %s2020_s5, %s1402_s19  ;;  %s910_s30 = scalar_lea.vmem %s2024_s9, %s1402_s19 }
 0x245   : >> { %1437 = vmatprep.subr.bf16.mxu1 %v1657_v42  ;;  %1439 = vmatprep.mubr.msk.bf16.mxu1 %vm1658_vm3, %v1657_v42  ;;  %v1539_v43 = vld [vmem:[%s776_s18] sm:$0xff]   ;;  %v1540_v44 = vld [vmem:[%s776_s18 + $0x8] sm:$0xff]   ;;  %s842_s2 = scalar_lea.vmem [#allocation2], %s1376_s26  ;;  %s781_s29 = scalar_lea.vmem %s2021_s6, %s1654_s24 }
 0x246   : >> { %1430 = vmatpush3.bf16.msra.mxu0 %v1539_v43  ;;  %v1379_v48 = vld [vmem:[%s781_s29] ss:$0 sm:$0xff]  ;;  %v1542_v56 = vld [vmem:[%s910_s30 + $0x8] sm:$0xff]   ;;  %s915_s21 = scalar_lea.vmem %s2025_s10, %s1654_s24  ;;  %s1391_s23 = sshll.u32 %s1654_s24, 2 }
 0x247   : >> { %1431 = vmatprep.subr.bf16.mxu0 %v1657_v42  ;;  %v1541_v55 = vld [vmem:[%s910_s30] sm:$0xff]   ;;  %s1026_s19 = scalar_lea.vmem %s2026_s11, %s1391_s23  ;;  %s772_s24 = sadd.s32 1, %s1654_s24  }
 0x248   : >> { %v1386_v63 = vld [vmem:[%s915_s21] ss:$0 sm:$0xff]  ;;  %p769_p11 = scmp.ge.s32.totalorder %s772_s24, 4  }
 0x249   : >> { %v843_v45 = vld [vmem:[%s842_s2] sm:$0xff]  ;;  %1547 = vset.pattern.permute.xlu0 (%p769_p11), %v1656_v4  ;;  %v1659_v34 = vmov (%p769_p11), 0.0   ;;  %vm1660_vm5 = vmmov (%p769_p11), 0   ;;  %s1398_s23 = sshll.u32 (%p769_p11), %s1774_s28, 6  ;;  %s1203_s20 = sshll.u32 (%p769_p11), %s1857_s22, 4  ;;  %s1204_s20 = int_to_ptr.vmem [resolvable:$true] %s1203_s20 }
 0x24a   : >> { %1432 = vmatpush3.bf16.msra.mxu0 %v1540_v44  ;;  %v844_v46 = vpack.c.bf16 %v843_v45, %v843_v45  ;;  %v1027_v14 = vld [vmem:[%s1026_s19] sm:$0xf]  ;;  %s1945_s19 = scalar_lea.hbm (%p769_p11), %s2031_s16, %s1398_s23  ;;  %s1185_s29 = scalar_lea.sflag (%p769_p11), [#allocation5], %s1836_s12 }
 0x24b   : >> { %1451 = vmatprep.subr.bf16.mxu0 %v1657_v42  ;;  %v1032_v15 = vsel %vm854_vm4, %v1027_v14, 0  ;;  %v1169_v36 = vld [vmem:[%s2030_s15] sm:$0x3] (%p769_p11)  ;;  %s1552_s3 = scalar_lea.vmem (%p769_p11), %s1204_s20, 64  ;;  %s1661_s24 = smov (%p769_p11), [#allocation4]  }
 0x24c   : >> { %v856_v47 = vsel %vm854_vm4, %v844_v46, 0  ;;  %v1078_v4 = vld [vmem:[%s2028_s13] sm:$0x1] (%p769_p11)  ;;  %p1553_p12 = scmp.ne.s32.totalorder (%p769_p11), %s1204_s20, %s1552_s3  ;;  %s1556_s2 = sshll.u32 (%p769_p11), %s1661_s24, 4  ;;  %s1557_s2 = int_to_ptr.vmem [resolvable:$false] %s1556_s2 }
 0x24d   : >> { %1434 = vmatmul.mubr.msk.bf16.vlgmr.msra.gmra.mrb[0].mxu0 %vm619_vm0, %v1855_v27  ;;  %1438 = vmatpush3.bf16.msra.mxu1 %v856_v47  ;;  %s1558_s18 = scalar_lea.vmem (%p769_p11), %s1557_s2, 128  ;;  %p1559_p1 = scmp.lt.s32.totalorder (%p769_p11), %s1204_s20, %s1557_s2 }
 0x24e   : >> { %1453 = vmatprep.mubr.msk.bf16.mxu0 %vm1658_vm3, %v1657_v42  ;;  %1443 = vmatprep.subr.bf16.mxu1 %v1657_v42  ;;  %p1554_p13 = pnand (%p769_p11), %p1553_p12, %p1791_p5  ;;  %p1560_p2 = scmp.lt.s32.totalorder (%p769_p11), %s1558_s18, %s1552_s3 }
 0x250   : > { %p1555_p0 = pneg (%p769_p11), %p1554_p13  ;;  %p1561_p3 = por (%p769_p11), %p1560_p2, %p1559_p1 }
 0x252   : > { %p1562_p4 = pnand (%p769_p11), %p1561_p3, %p1555_p0 }
 0x320   : >> { %v835_v49 = vpop.f32.mrb[0].mxu0 }
 0x321   : >> { %v836_v50 = vadd.f32 %v1379_v48, %v835_v49  ;;  %v1435_v51 = vpop.f32.mrb[1].mxu0 }
 0x322   : >> { %v838_v52 = vpop.f32.mrb[2].mxu0 }
 0x323   : >> { %v841_v53 = vpack.c.bf16 %v836_v50, %v836_v50  ;;  %v1436_v54 = vpop.f32.mrb[3].mxu0 }
 0x325   : >> { %1440 = vmatmul.mubr.msk.bf16.vlgmr.msra.gmra.mrb[0].mxu1 %vm754_vm2, %v841_v53 }
 0x326   : >> { %1447 = vmatprep.mubr.msk.bf16.mxu1 %vm1658_vm3, %v1657_v42  ;;  %1444 = vmatpush3.bf16.msra.mxu1 %v1541_v55 }
 0x327   : >> { %1445 = vmatprep.subr.bf16.mxu1 %v1657_v42 }
 0x32a   : >> { %1446 = vmatpush3.bf16.msra.mxu1 %v1542_v56 }
 0x32b   : >> { %1457 = vmatprep.subr.bf16.mxu1 %v1657_v42 }
 0x32d   : >> { %1448 = vmatmul.mubr.msk.bf16.vlgmr.msra.gmra.mrb[4].mxu1 %vm619_vm0, %v1855_v27  ;;  %v1079_v27 = vld [vmem:[%s2029_s14] sm:$0x1] (%p769_p11) }
 0x32e   : >> { %1459 = vmatprep.mubr.msk.bf16.mxu1 %vm1658_vm3, %v1657_v42  ;;  %1458 = vmatpush3.bf16.msra.mxu1 %v1032_v15 }
 0x32f   : > { %1469 = vmatprep.subr.bf16.mxu1 (%p769_p11), %v1659_v34 }
 0x3f8   : >> { %v892_v57 = vpop.f32.mrb[0].mxu1 }
 0x3f9   : >> { %v893_v58 = vadd.f32 %v1817_v1, %v892_v57  ;;  %v1441_v59 = vpop.f32.mrb[1].mxu1 }
 0x3fa   : >> { %v895_v60 = vpop.f32.mrb[2].mxu1 }
 0x3fb   : >> { %v1442_v61 = vpop.f32.mrb[3].mxu1  ;;  %v898_v62 = vsel %vm754_vm2, %v893_v58, -inf }
 0x3fc   : >> { %899 = vmax.xlane.f32.xlu0 %v898_v62 }
 0x400   : >> { %v969_v0 = vpop.f32.mrb[4].mxu1 }
 0x401   : >> { %v970_v2 = vadd.f32 %v1386_v63, %v969_v0  ;;  %v1449_v3 = vpop.f32.mrb[5].mxu1 }
 0x402   : >> { %v972_v5 = vpop.f32.mrb[6].mxu1 }
 0x403   : >> { %v975_v6 = vpack.c.bf16 %v970_v2, %v970_v2  ;;  %v1450_v7 = vpop.f32.mrb[7].mxu1 }
 0x405   : >> { %v981_v8 = vsel %vm854_vm4, %v975_v6, 0 }
 0x406   : >> { %1452 = vmatpush3.bf16.msra.mxu0 %v981_v8 }
 0x407   : > { %1463 = vmatprep.subr.bf16.mxu0 (%p769_p11), %v1659_v34 }
 0x489   : >> { %v900_v9 = vpop.xlane.xlu0 %899 }
 0x48a   : >> { %v901_v10 = vsub.f32 %v893_v58, %v900_v9 }
 0x48c   : >> { %v902_v11 = vmul.f32 1.442695, %v901_v10 }
 0x48e   : >> { %1543 = vpow2.f32 %v902_v11 }
 0x498   : >> { %v1544_v12 = vpop.eup %1543 }
 0x499   : >> { %v904_v13 = vsel %vm754_vm2, %v1544_v12, 0.0 }
 0x49a   : >> { %905 = vadd.xlane.f32.xlu0 %v904_v13 }
 0x4b0   : > { %1172 = vperm.xlu0 (%p769_p11), %1547, %v1169_v36  }
 0x527   : >> { %v906_v16 = vpop.xlane.xlu0 %905 }
 0x528   : >> { %1545 = vrcp.f32 %v906_v16 }
 0x532   : >> { %v1546_v17 = vpop.eup %1545 }
 0x533   : >> { %v908_v18 = vmul.f32 %v1546_v17, %v1544_v12 }
 0x535   : >> { %v976_v19 = vpack.c.bf16 %v908_v18, %v908_v18 }
 0x537   : >> { %1454 = vmatmul.mubr.msk.bf16.vlgmr.msra.gmra.mrb[4].mxu0 %vm754_vm2, %v976_v19 }
 0x538   : > { %1465 = vmatprep.mubr.msk.bf16.mxu0 (%p769_p11), %vm1660_vm5, %v1659_v34 }
 0x60a   : >> { %v1017_v20 = vpop.f32.mrb[4].mxu0 }
 0x60b   : >> { %v1024_v21 = vpack.c.bf16 %v1017_v20, %v1017_v20  ;;  %v1455_v22 = vpop.f32.mrb[5].mxu0 }
 0x60c   : >> { %v1020_v23 = vpop.f32.mrb[6].mxu0 }
 0x60d   : >> { %v1456_v24 = vpop.f32.mrb[7].mxu0  ;;  %1460 = vmatmul.mubr.msk.bf16.vlgmr.msra.gmra.mrb[8].mxu1 %vm754_vm2, %v1024_v21 }
 0x60e   : > { %1470 = vmatpush3.bf16.xpose.msra.mxu1 (%p769_p11), %v1865_v28  ;;  %1471 = vmatprep.mubr.msk.bf16.mxu1 (%p769_p11), %vm1660_vm5, %v1659_v34 }
 0x615   : > { %1472 = vmatmul.mubr.msk.bf16.vlgmr.msra.gmra.mrb[0].mxu1 (%p769_p11), %vm619_vm0, %v1078_v4 }
 0x6dd   : > { %771 = sbr.rel (!%p769_p11) target bundleno = 579 (0x243), region = 161 }
 0x6e0   : >> { %v1068_v26 = vpop.f32.mrb[8].mxu1 }
 0x6e1   : >> { %v1074_v29 = vadd.f32 %v1068_v26, %v1023_v25  ;;  %v1461_v30 = vpop.f32.mrb[9].mxu1 }
 0x6e2   : >> { %v1071_v31 = vpop.f32.mrb[10].mxu1 }
 0x6e3   : >> { %1075 = vst.msk [vmem:[#allocation3] sm:$0xff] %vm619_vm0, %v1074_v29  ;;  %v1462_v32 = vpop.f32.mrb[11].mxu1 }
 0x6ea   : > { %v1076_v33 = vld [vmem:[#allocation3] sm:$0xff] }
 0x6eb   : > { %v1077_v35 = vpack.c.bf16 %v1076_v33, %v1076_v33 }
 0x6ed   : > { %v1084_v1 = vsel %vm619_vm0, %v1077_v35, 0 }
 0x6ee   : > { %1464 = vmatpush3.bf16.xpose.msra.mxu0 %v1084_v1 }
 0x6f5   : > { %1466 = vmatmul.mubr.msk.bf16.vlgmr.msra.gmra.mrb[0].mxu0 %vm619_vm0, %v1079_v27 }
 0x6f6   : > { %1565 = shalt.err (!%p1562_p4)
}
 0x6f7   : > { %s1566_s22 = scalar_lea.hbm %s1945_s19, 64  ;;  %s1570_s30 = scalar_lea.hbm %s2031_s16, 128 }
 0x6f8   : > { %p1567_p7 = scmp.ne.s32.totalorder %s1945_s19, %s1566_s22  ;;  %p1571_p10 = scmp.lt.u32.totalorder %s1945_s19, %s2031_s16 }
 0x6f9   : > { %p1572_p11 = scmp.lt.u32.totalorder %s1570_s30, %s1566_s22  ;;  %p1574_p13 = scmp.lt.u32.totalorder %s1566_s22, %s1945_s19 }
 0x6fa   : > { %p1568_p8 = pnand %p1567_p7, %p1791_p5 }
 0x6fb   : > { %p1573_p12 = por %p1572_p11, %p1571_p10 }
 0x6fc   : > { %p1569_p9 = pneg %p1568_p8 }
 0x6fd   : > { %p1575_p0 = por %p1574_p13, %p1573_p12 }
 0x6ff   : > { %p1576_p1 = pnand %p1575_p0, %p1569_p9 }
 0x701   : > { %1579 = shalt.err (!%p1576_p1)
}
 0x702   : > { %1476 = dma.vmem_to_hbm [thread:$0]  (%p1791_p5), %s1204_s20, 64, %s1945_s19, %s1185_s29   ;;  %v1163_v28 = vpop.f32.mrb[0].mxu1  ;;  %v1173_v38 = vpop.permute.xlu0 %1172  ;;  %vm1182_vm6 = vcmask 58368  }
 0x703   : > { %v1473_v37 = vpop.f32.mrb[1].mxu1  ;;  %s1399_s3 = sshll.u32 %s1774_s28, 5  ;;  %s1216_s19 = sshll.u32 %s1878_s0, 4  ;;  %s1973_s19 = int_to_ptr.vmem [resolvable:$true] %s1216_s19 }
 0x704   : > { %v1166_v40 = vpop.f32.mrb[2].mxu1  ;;  %s1971_s2 = scalar_lea.hbm %s2032_s17, %s1399_s3  ;;  %s1190_s18 = scalar_lea.sflag [#allocation7], %s1836_s12 }
 0x705   : > { %v1474_v43 = vpop.f32.mrb[3].mxu1  ;;  %s1580_s22 = scalar_lea.vmem %s1973_s19, 32  ;;  %s1662_s28 = smov [#allocation6]  }
 0x706   : > { %p1581_p2 = scmp.ne.s32.totalorder %s1973_s19, %s1580_s22  ;;  %s1584_s21 = sshll.u32 %s1662_s28, 4  ;;  %s1585_s21 = int_to_ptr.vmem [resolvable:$false] %s1584_s21 }
 0x707   : > { %s1586_s23 = scalar_lea.vmem %s1585_s21, 64  ;;  %p1587_p7 = scmp.lt.s32.totalorder %s1973_s19, %s1585_s21 }
 0x708   : > { %p1582_p3 = pnand %p1581_p2, %p1791_p5  ;;  %p1588_p8 = scmp.lt.s32.totalorder %s1586_s23, %s1580_s22 }
 0x70a   : > { %p1583_p4 = pneg %p1582_p3  ;;  %p1589_p9 = por %p1588_p8, %p1587_p7 }
 0x70c   : > { %p1590_p10 = pnand %p1589_p9, %p1583_p4 }
 0x7c8   : > { %v1120_v39 = vpop.f32.mrb[0].mxu0 }
 0x7c9   : > { %v1164_v41 = vadd.f32 %v1163_v28, %v1120_v39  ;;  %v1467_v42 = vpop.f32.mrb[1].mxu0 }
 0x7ca   : > { %v1123_v44 = vpop.f32.mrb[2].mxu0 }
 0x7cb   : > { %v1175_v45 = vadd.f32 %v1173_v38, %v1164_v41  ;;  %v1468_v46 = vpop.f32.mrb[3].mxu0 }
 0x7cd   : > { %v1395_v47 = vmul.f32 -1.442695, %v1175_v45 }
 0x7cf   : > { %1548 = vpow2.f32 %v1395_v47 }
 0x7d9   : > { %v1549_v48 = vpop.eup %1548 }
 0x7da   : > { %v1179_v49 = vadd.f32 1.0, %v1549_v48 }
 0x7dc   : > { %1550 = vrcp.f32 %v1179_v49 }
 0x7e6   : > { %v1551_v50 = vpop.eup %1550 }
 0x7e7   : > { %1183 = vst.msk [vmem:[%s1878_s0] sm:$0x3] %vm1182_vm6, %v1551_v50 }
 0x7e8   : > { %1593 = shalt.err (!%p1590_p10)
}
 0x7e9   : > { %s1594_s12 = scalar_lea.hbm %s1971_s2, 32  ;;  %s1598_s26 = scalar_lea.hbm %s2032_s17, 64 }
 0x7ea   : > { %p1595_p11 = scmp.ne.s32.totalorder %s1971_s2, %s1594_s12  ;;  %p1599_p0 = scmp.lt.u32.totalorder %s1971_s2, %s2032_s17 }
 0x7eb   : > { %p1600_p1 = scmp.lt.u32.totalorder %s1598_s26, %s1594_s12  ;;  %p1602_p3 = scmp.lt.u32.totalorder %s1594_s12, %s1971_s2 }
 0x7ec   : > { %p1596_p12 = pnand %p1595_p11, %p1791_p5 }
 0x7ed   : > { %p1601_p2 = por %p1600_p1, %p1599_p0 }
 0x7ee   : > { %p1597_p13 = pneg %p1596_p12 }
 0x7ef   : > { %p1603_p4 = por %p1602_p3, %p1601_p2 }
 0x7f1   : > { %p1604_p7 = pnand %p1603_p4, %p1597_p13 }
 0x7f3   : > { %1607 = shalt.err (!%p1604_p7)
}
 0x7f4   : > { %1477 = dma.vmem_to_hbm [thread:$0]  (%p1791_p5), %s1973_s19, 32, %s1971_s2, %s1190_s18  }
 0x7f5 PF: > { %s2056_s20 = sld [smem:[#allocation10_spill]]  ;;  %p1487_p8 = scmp.ge.s32.totalorder %s1650_s27, 2 }
 0x7f7   : > { %p1481_p9 = pnand %p1487_p8, %p1795_p6 }
 0x7fb   : > { %s1228_s22 = sand.u32 1, %s2056_s20  }
 0x7fc   : > { %s1229_s28 = scalar_lea.sflag [#allocation5], %s1228_s22 }
 0x7fd   : > { %1629 = dma.done.wait (!%p1481_p9), %s1229_s28, 64  }
 0x7fe   : > { %1631 = vsyncadd (!%p1481_p9), %s1229_s28, 4294967232  ;;  %s1238_s21 = scalar_lea.sflag [#allocation7], %s1228_s22 }
 0x7ff   : > { %1633 = dma.done.wait (!%p1481_p9), %s1238_s21, 32  }
 0x800   : > { %1635 = vsyncadd (!%p1481_p9), %s1238_s21, 4294967264  ;;  %s2058_s27 = sld [smem:[#allocation12_spill]]  ;;  %s2059_s1 = sld [smem:[#allocation11_spill]] }
 0x801   : > { %s2060_s26 = sld [smem:[#allocation13_spill]]  ;;  %s2061_s24 = smov %s1642_s25 }
 0x806   : > { %p31_p5 = scmp.ge.s32.totalorder %s2058_s27, 4   ;;  %s2062_s25 = smov %s2059_s1 }
 0x808   :  { %33 = sbr.rel (!%p31_p5) target bundleno = 11 (0xb), region = 172 }
 0x80f   :  { %1243 = vsyncpa [#allocation5], 1 }
 0x810   :  { %1245 = vsyncpa [#allocation5 + $0x1], 1 }
 0x811   :  { %1246 = vsyncpa [#allocation7], 1 }
 0x812   :  { %1248 = vsyncpa [#allocation7 + $0x1], 1 }

</bundles_post_ra>
